<compile_context>
chip_gen: v7x
topology: tpu7x:2x2x1
jax: 0.10.0
libtpu: 0.0.40
codegen_flags: <defaults>
</compile_context>

<pallas_src>
import jax
import jax.numpy as jnp
from jax.experimental import pallas as pl
from jax.experimental.pallas import tpu as pltpu

_ROW_ALIGN = 16  # bf16 sublane packing


def _round_up(x, m):
    return ((x + m - 1) // m) * m


# ----------------------------------------------------------------------------
# Pallas kernel: fused GVPLinear (vector_gate=True) + optional GVPLayerNorm
# ----------------------------------------------------------------------------
def _make_gvp_kernel(hd, scalar_act, vector_act, layernorm):
    def kernel(s_ref, v_ref, wcat_ref, wss_ref, wdsvd_ref, wsv_ref,
               bs_ref, bsv_ref, *rest):
        if layernorm:
            gamma_ref, beta_ref, out_ref = rest
        else:
            (out_ref,) = rest

        f32 = jnp.float32
        bf16 = jnp.bfloat16

        s = s_ref[...]                                  # (TR, si)    bf16
        v3 = v_ref[...]                                 # (3, TR, vi) bf16
        tr = v3.shape[1]
        v2 = v3.reshape(3 * tr, v3.shape[2])            # (3*TR, vi)

        # One MXU issue for the three projections that share LHS v2:
        # [wl | wr | wh@wv] concatenated along the output dim.
        big = jnp.dot(v2, wcat_ref[...], preferred_element_type=f32)
        lproj = big[:, 0:hd]                            # (3*TR, hd)  f32
        rproj = big[:, hd:2 * hd]
        ovall = big[:, 2 * hd:]                         # (3*TR, vo)

        # LinearFullyConnectedDotProductLayer: elementwise product of the two
        # projections, summed over the three spatial components.
        prod = lproj * rproj
        dprod = prod[0:tr] + prod[tr:2 * tr] + prod[2 * tr:3 * tr]  # (TR, hd)

        # Fused scalar path: s@wss + dprod@(wdot@wsvd) + (bs + bdot@wsvd)
        s_out = (jnp.dot(s, wss_ref[...], preferred_element_type=f32)
                 + jnp.dot(dprod.astype(bf16), wdsvd_ref[...],
                           preferred_element_type=f32)
                 + bs_ref[...])

        ovx = ovall[0:tr]                               # (TR, vo) f32
        ovy = ovall[tr:2 * tr]
        ovz = ovall[2 * tr:3 * tr]

        # Vector gating (pre-scalar-activation s_out, matching torch GVP).
        if vector_act == "sigmoid":
            gate_in = jax.nn.sigmoid(s_out)
        else:
            gate_in = s_out
        gate = jax.nn.sigmoid(
            jnp.dot(gate_in.astype(bf16), wsv_ref[...],
                    preferred_element_type=f32) + bsv_ref[...])    # (TR, vo)
        ovx = ovx * gate
        ovy = ovy * gate
        ovz = ovz * gate

        if scalar_act == "relu":
            s_out = jnp.maximum(s_out, 0.0)
        # dropout p=0 in this configuration -> identity

        if layernorm:
            # GVPLayerNorm: vectors scaled by rsqrt(mean_c clamp(||v_c||^2)),
            # scalars by standard LayerNorm (eps=1e-5, affine).  All in f32.
            vn2 = jnp.maximum(ovx * ovx + ovy * ovy + ovz * ovz, 1e-8)
            inv = jax.lax.rsqrt(jnp.mean(vn2, axis=-1, keepdims=True))
            ovx = ovx * inv
            ovy = ovy * inv
            ovz = ovz * inv
            mu = jnp.mean(s_out, axis=-1, keepdims=True)
            var = jnp.mean((s_out - mu) ** 2, axis=-1, keepdims=True)
            s_out = ((s_out - mu) * jax.lax.rsqrt(var + 1e-5)
                     * gamma_ref[...] + beta_ref[...])

        # Single lane-dense output slab [TR, so + 3*vo].
        out_ref[...] = jnp.concatenate([s_out, ovx, ovy, ovz], axis=-1)

    return kernel


def gvp_block(s, v, p, *, scalar_act, vector_act, layernorm, tile_rows=512):
    """Apply fused GVPLinear(+GVPLayerNorm) to R rows via pallas_call.

    s: [R, si] scalars; v: [3, R, vi] stacked vector components.
    Returns (s_out [R, so], v_out [3, R, vo]) in float32.
    """
    R, si = s.shape
    vi = v.shape[2]
    hd = p["wl"].shape[1]
    so = p["bs"].shape[1]
    vo = p["wv"].shape[1]

    f32 = jnp.float32
    bf16 = jnp.bfloat16

    # Algebraic pre-fusion in f32, then cast matmul weights to bf16.
    wcat = jnp.concatenate(
        [p["wl"], p["wr"], jnp.dot(p["wh"], p["wv"])], axis=1).astype(bf16)
    wdsvd = jnp.dot(p["wdot"], p["wsvd"]).astype(bf16)        # (hd, so)
    bs_fused = (p["bs"] + jnp.dot(p["bdot"], p["wsvd"])).astype(f32)
    wss = p["wss"].astype(bf16)
    wsv = p["wsv"].astype(bf16)
    bsv = p["bsv"].astype(f32)

    # Balanced row tiling; >=2 tiles when possible so the parallel axis can
    # shard across v7x's two TensorCores.
    nt = pl.cdiv(R, tile_rows)
    if R >= 2 * _ROW_ALIGN:
        nt = max(nt, 2)
    tr = _round_up(pl.cdiv(R, nt), _ROW_ALIGN)
    Rp = tr * nt
    pad = Rp - R

    s_in = s.astype(bf16)
    v_in = v.astype(bf16)
    if pad:
        s_in = jnp.pad(s_in, ((0, pad), (0, 0)))
        v_in = jnp.pad(v_in, ((0, 0), (0, pad), (0, 0)))

    weights = [wcat, wss, wdsvd, wsv, bs_fused, bsv]
    if layernorm:
        weights += [p["gamma"].astype(f32), p["beta"].astype(f32)]

    # TODO(synk): constant-index weight specs could be single-buffered
    # (pipeline_mode=pl.Buffered(1)) to halve their VMEM footprint on v7x.
    # TODO(synk): for production channel widths, pad hd/so/vo to 128 (with
    # masked LN reductions) so lane slices and stores are fully dense.
    def full_spec(arr):
        n = arr.ndim
        return pl.BlockSpec(arr.shape, lambda i, n=n: (0,) * n)

    W = so + 3 * vo
    in_specs = ([pl.BlockSpec((tr, si), lambda i: (i, 0)),
                 pl.BlockSpec((3, tr, vi), lambda i: (0, i, 0))]
                + [full_spec(w) for w in weights])
    out_specs = pl.BlockSpec((tr, W), lambda i: (i, 0))
    out_shape = jax.ShapeDtypeStruct((Rp, W), f32)

    kernel = _make_gvp_kernel(hd, scalar_act, vector_act, layernorm)
    slab = pl.pallas_call(
        kernel,
        grid=(nt,),
        in_specs=in_specs,
        out_specs=out_specs,
        out_shape=out_shape,
        compiler_params=pltpu.CompilerParams(
            dimension_semantics=("parallel",),
            vmem_limit_bytes=32 * 1024 * 1024),
    )(s_in, v_in, *weights)

    slab = slab[:R]
    s_o = slab[:, :so]
    v_o = jnp.stack([slab[:, so:so + vo],
                     slab[:, so + vo:so + 2 * vo],
                     slab[:, so + 2 * vo:so + 3 * vo]], axis=0)
    return s_o, v_o


# ----------------------------------------------------------------------------
# Model glue (gathers / scatter-add / residuals stay in plain JAX)
# ----------------------------------------------------------------------------
def gvp_mpnn_layer(s, v, edge_index, lp):
    send = edge_index[0]
    rec = edge_index[1]
    N = s.shape[0]

    # message: cat((receiver, sender)) along the channel dim
    # TODO(synk): per-edge gather + concat kept in plain JAX; a scalar-prefetch
    # row gather inside the kernel would avoid the HBM round-trip of [E, 2C].
    s_in = jnp.concatenate([s[rec], s[send]], axis=-1)
    v_in = jnp.concatenate([v[:, rec], v[:, send]], axis=-1)
    sm, mv = gvp_block(s_in, v_in, lp["edge"], scalar_act="relu",
                       vector_act="sigmoid", layernorm=True)

    # global_add_pool over receiver indices (segment sum)
    # TODO(synk): dynamic-index scatter-add aggregation kept in plain JAX.
    s_agg = jnp.zeros((N, sm.shape[1]), jnp.float32).at[rec].add(sm)
    v_agg = jnp.zeros((3, N, mv.shape[2]), jnp.float32).at[:, rec].add(mv)

    # update: cat([h, h_agg]) -> node model, residual add
    us = jnp.concatenate([s, s_agg], axis=-1)
    uv = jnp.concatenate([v, v_agg], axis=-1)
    os_, ov = gvp_block(us, uv, lp["node"], scalar_act="relu",
                        vector_act="sigmoid", layernorm=True)
    return s + os_, v + ov


def egnn_gvp_forward(h, x, edge_index, params):
    # h: [N, in_node_nf], x: [N, 3]
    x_mean = jnp.mean(x, axis=0, keepdims=True)
    rel = x - x_mean                                # input vector channel vi=1
    v = jnp.transpose(rel)[:, :, None]              # (3, N, 1)

    # feature embedding: GVPLinear (no activations, vector_gate) + GVPLayerNorm
    s, v = gvp_block(h, v, params["embed"],
                     scalar_act=None, vector_act=None, layernorm=True)

    # GVPMPNN stack
    for lp in params["layers"]:
        s, v = gvp_mpnn_layer(s, v, edge_index, lp)

    # projection: GVPLinear (no activations, vector_gate), vo = 1
    s_out, pv = gvp_block(s, v, params["proj"],
                          scalar_act=None, vector_act=None, layernorm=False)
    pos = jnp.transpose(pv[:, :, 0]) + x_mean       # (N, 3)
    return s_out, pos


# ----------------------------------------------------------------------------
# Deterministic synthetic parameters
# ----------------------------------------------------------------------------
def _init_gvp_params(key, si, vi, so, vo, hd, scale=0.1):
    ks = jax.random.split(key, 13)

    def w(k, shape):
        return scale * jax.random.normal(k, shape, dtype=jnp.float32)

    return dict(
        wl=w(ks[0], (vi, hd)),           # linear_left  (no bias)
        wr=w(ks[1], (vi, hd)),           # linear_right (no bias)
        wdot=w(ks[2], (hd, hd)),         # linear_out
        bdot=w(ks[3], (1, hd)),
        wss=w(ks[4], (si, so)),          # ws, s-part
        wsvd=w(ks[5], (hd, so)),         # ws, vd-part
        bs=w(ks[6], (1, so)),
        wh=w(ks[7], (vi, hd)),           # wh (no bias)
        wv=w(ks[8], (hd, vo)),           # wv (no bias)
        wsv=w(ks[9], (so, vo)),          # wsv (gate)
        bsv=w(ks[10], (1, vo)),
        gamma=1.0 + w(ks[11], (1, so)),  # GVPLayerNorm scalar affine
        beta=w(ks[12], (1, so)),
    )


def init_params(key, in_node_nf, hidden_nf, hidden_nvf, n_layers, out_node_nf):
    keys = jax.random.split(key, 2 + 2 * n_layers)
    params = {}
    params["embed"] = _init_gvp_params(
        keys[0], si=in_node_nf, vi=1, so=hidden_nf, vo=hidden_nvf,
        hd=max(1, hidden_nvf))
    layers = []
    for i in range(n_layers):
        edge = _init_gvp_params(
            keys[1 + 2 * i], si=2 * hidden_nf, vi=2 * hidden_nvf,
            so=hidden_nf, vo=hidden_nvf, hd=2 * hidden_nvf)
        node = _init_gvp_params(
            keys[2 + 2 * i], si=2 * hidden_nf, vi=2 * hidden_nvf,
            so=hidden_nf, vo=hidden_nvf, hd=2 * hidden_nvf)
        layers.append(dict(edge=edge, node=node))
    params["layers"] = layers
    params["proj"] = _init_gvp_params(
        keys[-1], si=hidden_nf, vi=hidden_nvf, so=out_node_nf, vo=1,
        hd=max(hidden_nvf, 1))
    return params


# ----------------------------------------------------------------------------
if __name__ == "__main__":
    N = 8
    in_node_nf = 8
    hidden_nf = 32
    hidden_nvf = 16
    n_layers = 2
    out_node_nf = in_node_nf

    key = jax.random.PRNGKey(0)
    kh, kx, kp = jax.random.split(key, 3)
    h = jax.random.normal(kh, (N, in_node_nf), dtype=jnp.float32)
    x = jax.random.normal(kx, (N, 3), dtype=jnp.float32)

    # fully connected graph without self loops (E = N*(N-1) = 56)
    send, rec = [], []
    for i in range(N):
        for j in range(N):
            if i != j:
                send.append(i)
                rec.append(j)
    edge_index = jnp.array([send, rec], dtype=jnp.int32)

    params = init_params(kp, in_node_nf, hidden_nf, hidden_nvf, n_layers,
                         out_node_nf)

    h_out, pos_out = egnn_gvp_forward(h, x, edge_index, params)
    jax.block_until_ready((h_out, pos_out))
    assert h_out.shape == (N, out_node_nf)
    assert pos_out.shape == (N, 3)
    print("KERNEL_OK")
</pallas_src>

<mosaic_0001>
module attributes {stable_mosaic.version = 11 : i64} {
  func.func @kernel(%arg0: i32, %arg1: memref<16x8xbf16, #tpu.memory_space<vmem>>, %arg2: memref<3x16x1xbf16, #tpu.memory_space<vmem>>, %arg3: memref<1x48xbf16, #tpu.memory_space<vmem>>, %arg4: memref<8x32xbf16, #tpu.memory_space<vmem>>, %arg5: memref<16x32xbf16, #tpu.memory_space<vmem>>, %arg6: memref<32x16xbf16, #tpu.memory_space<vmem>>, %arg7: memref<1x32xf32, #tpu.memory_space<vmem>>, %arg8: memref<1x16xf32, #tpu.memory_space<vmem>>, %arg9: memref<1x32xf32, #tpu.memory_space<vmem>>, %arg10: memref<1x32xf32, #tpu.memory_space<vmem>>, %arg11: memref<16x80xf32, #tpu.memory_space<vmem>>) attributes {dimension_semantics = [#tpu.dimension_semantics<parallel>], iteration_bounds = array<i64: 1>, scalar_prefetch = 0 : i64, scratch_operands = 0 : i64, tpu.core_type = #tpu.core_type<tc>, window_params = [{transform_indices = @transform_0, window_bounds = array<i64: 16, 8>}, {transform_indices = @transform_1, window_bounds = array<i64: 3, 16, 1>}, {pipeline_mode = #tpu.pipeline_mode<synchronous>, transform_indices = @transform_2, window_bounds = array<i64: 1, 48>}, {pipeline_mode = #tpu.pipeline_mode<synchronous>, transform_indices = @transform_3, window_bounds = array<i64: 8, 32>}, {pipeline_mode = #tpu.pipeline_mode<synchronous>, transform_indices = @transform_4, window_bounds = array<i64: 16, 32>}, {pipeline_mode = #tpu.pipeline_mode<synchronous>, transform_indices = @transform_5, window_bounds = array<i64: 32, 16>}, {pipeline_mode = #tpu.pipeline_mode<synchronous>, transform_indices = @transform_6, window_bounds = array<i64: 1, 32>}, {pipeline_mode = #tpu.pipeline_mode<synchronous>, transform_indices = @transform_7, window_bounds = array<i64: 1, 16>}, {pipeline_mode = #tpu.pipeline_mode<synchronous>, transform_indices = @transform_8, window_bounds = array<i64: 1, 32>}, {pipeline_mode = #tpu.pipeline_mode<synchronous>, transform_indices = @transform_9, window_bounds = array<i64: 1, 32>}, {transform_indices = @transform_10, window_bounds = array<i64: 16, 80>}]} {
    %c0 = arith.constant 0 : index
    %c0_0 = arith.constant 0 : index
    %0 = vector.load %arg1[%c0, %c0_0] : memref<16x8xbf16, #tpu.memory_space<vmem>>, vector<16x8xbf16>
    %c0_1 = arith.constant 0 : index
    %c0_2 = arith.constant 0 : index
    %c0_3 = arith.constant 0 : index
    %1 = vector.load %arg2[%c0_1, %c0_2, %c0_3] : memref<3x16x1xbf16, #tpu.memory_space<vmem>>, vector<3x16x1xbf16>
    %2 = vector.shape_cast %1 : vector<3x16x1xbf16> to vector<48x1xbf16>
    %c0_4 = arith.constant 0 : index
    %c0_5 = arith.constant 0 : index
    %3 = vector.load %arg3[%c0_4, %c0_5] : memref<1x48xbf16, #tpu.memory_space<vmem>>, vector<1x48xbf16>
    %cst = arith.constant dense<0.000000e+00> : vector<48x48xf32>
    %4 = tpu.matmul %2, %3, %cst {dimension_numbers = #tpu.dot_dimension_numbers<[1], [0], [0], [1], [0, 0, 1, 1], [], []>} : vector<48x1xbf16>, vector<1x48xbf16>, vector<48x48xf32> -> vector<48x48xf32>
    %5 = vector.extract_strided_slice %4 {offsets = [0, 0], sizes = [48, 16], strides = [1, 1]} : vector<48x48xf32> to vector<48x16xf32>
    %6 = vector.extract_strided_slice %4 {offsets = [0, 16], sizes = [48, 16], strides = [1, 1]} : vector<48x48xf32> to vector<48x16xf32>
    %7 = vector.extract_strided_slice %4 {offsets = [0, 32], sizes = [48, 16], strides = [1, 1]} : vector<48x48xf32> to vector<48x16xf32>
    %8 = arith.mulf %5, %6 : vector<48x16xf32>
    %9 = vector.extract_strided_slice %8 {offsets = [0, 0], sizes = [16, 16], strides = [1, 1]} : vector<48x16xf32> to vector<16x16xf32>
    %10 = vector.extract_strided_slice %8 {offsets = [16, 0], sizes = [16, 16], strides = [1, 1]} : vector<48x16xf32> to vector<16x16xf32>
    %11 = arith.addf %9, %10 : vector<16x16xf32>
    %12 = vector.extract_strided_slice %8 {offsets = [32, 0], sizes = [16, 16], strides = [1, 1]} : vector<48x16xf32> to vector<16x16xf32>
    %13 = arith.addf %11, %12 : vector<16x16xf32>
    %c0_6 = arith.constant 0 : index
    %c0_7 = arith.constant 0 : index
    %14 = vector.load %arg4[%c0_6, %c0_7] : memref<8x32xbf16, #tpu.memory_space<vmem>>, vector<8x32xbf16>
    %cst_8 = arith.constant dense<0.000000e+00> : vector<16x32xf32>
    %15 = tpu.matmul %0, %14, %cst_8 {dimension_numbers = #tpu.dot_dimension_numbers<[1], [0], [0], [1], [0, 0, 1, 1], [], []>} : vector<16x8xbf16>, vector<8x32xbf16>, vector<16x32xf32> -> vector<16x32xf32>
    %16 = arith.truncf %13 : vector<16x16xf32> to vector<16x16xbf16>
    %c0_9 = arith.constant 0 : index
    %c0_10 = arith.constant 0 : index
    %17 = vector.load %arg5[%c0_9, %c0_10] : memref<16x32xbf16, #tpu.memory_space<vmem>>, vector<16x32xbf16>
    %cst_11 = arith.constant dense<0.000000e+00> : vector<16x32xf32>
    %18 = tpu.matmul %16, %17, %cst_11 {dimension_numbers = #tpu.dot_dimension_numbers<[1], [0], [0], [1], [0, 0, 1, 1], [], []>} : vector<16x16xbf16>, vector<16x32xbf16>, vector<16x32xf32> -> vector<16x32xf32>
    %19 = arith.addf %15, %18 : vector<16x32xf32>
    %c0_12 = arith.constant 0 : index
    %c0_13 = arith.constant 0 : index
    %20 = vector.load %arg7[%c0_12, %c0_13] : memref<1x32xf32, #tpu.memory_space<vmem>>, vector<1x32xf32>
    %21 = vector.broadcast %20 : vector<1x32xf32> to vector<16x32xf32>
    %22 = arith.addf %19, %21 : vector<16x32xf32>
    %23 = vector.extract_strided_slice %7 {offsets = [0, 0], sizes = [16, 16], strides = [1, 1]} : vector<48x16xf32> to vector<16x16xf32>
    %24 = vector.extract_strided_slice %7 {offsets = [16, 0], sizes = [16, 16], strides = [1, 1]} : vector<48x16xf32> to vector<16x16xf32>
    %25 = vector.extract_strided_slice %7 {offsets = [32, 0], sizes = [16, 16], strides = [1, 1]} : vector<48x16xf32> to vector<16x16xf32>
    %26 = arith.truncf %22 : vector<16x32xf32> to vector<16x32xbf16>
    %c0_14 = arith.constant 0 : index
    %c0_15 = arith.constant 0 : index
    %27 = vector.load %arg6[%c0_14, %c0_15] : memref<32x16xbf16, #tpu.memory_space<vmem>>, vector<32x16xbf16>
    %cst_16 = arith.constant dense<0.000000e+00> : vector<16x16xf32>
    %28 = tpu.matmul %26, %27, %cst_16 {dimension_numbers = #tpu.dot_dimension_numbers<[1], [0], [0], [1], [0, 0, 1, 1], [], []>} : vector<16x32xbf16>, vector<32x16xbf16>, vector<16x16xf32> -> vector<16x16xf32>
    %c0_17 = arith.constant 0 : index
    %c0_18 = arith.constant 0 : index
    %29 = vector.load %arg8[%c0_17, %c0_18] : memref<1x16xf32, #tpu.memory_space<vmem>>, vector<1x16xf32>
    %30 = vector.broadcast %29 : vector<1x16xf32> to vector<16x16xf32>
    %31 = arith.addf %28, %30 : vector<16x16xf32>
    %32 = arith.negf %31 : vector<16x16xf32>
    %33 = math.exp %32 : vector<16x16xf32>
    %cst_19 = arith.constant 1.000000e+00 : f32
    %34 = vector.broadcast %cst_19 : f32 to vector<16x16xf32>
    %35 = arith.addf %34, %33 : vector<16x16xf32>
    %36 = arith.divf %34, %35 : vector<16x16xf32>
    %37 = arith.mulf %23, %36 : vector<16x16xf32>
    %38 = arith.mulf %24, %36 : vector<16x16xf32>
    %39 = arith.mulf %25, %36 : vector<16x16xf32>
    %40 = arith.mulf %37, %37 : vector<16x16xf32>
    %41 = arith.mulf %38, %38 : vector<16x16xf32>
    %42 = arith.addf %40, %41 : vector<16x16xf32>
    %43 = arith.mulf %39, %39 : vector<16x16xf32>
    %44 = arith.addf %42, %43 : vector<16x16xf32>
    %cst_20 = arith.constant 9.99999993E-9 : f32
    %45 = vector.broadcast %cst_20 : f32 to vector<16x16xf32>
    %46 = arith.maximumf %44, %45 : vector<16x16xf32>
    %cst_21 = arith.constant dense<0.000000e+00> : vector<16xf32>
    %47 = vector.multi_reduction <add>, %46, %cst_21 [1] : vector<16x16xf32> to vector<16xf32>
    %48 = vector.shape_cast %47 : vector<16xf32> to vector<16x1xf32>
    %cst_22 = arith.constant 1.600000e+01 : f32
    %49 = vector.broadcast %cst_22 : f32 to vector<16x1xf32>
    %50 = arith.divf %48, %49 : vector<16x1xf32>
    %51 = math.rsqrt %50 : vector<16x1xf32>
    %52 = vector.broadcast %51 : vector<16x1xf32> to vector<16x16xf32>
    %53 = arith.mulf %37, %52 : vector<16x16xf32>
    %54 = vector.broadcast %51 : vector<16x1xf32> to vector<16x16xf32>
    %55 = arith.mulf %38, %54 : vector<16x16xf32>
    %56 = vector.broadcast %51 : vector<16x1xf32> to vector<16x16xf32>
    %57 = arith.mulf %39, %56 : vector<16x16xf32>
    %cst_23 = arith.constant dense<0.000000e+00> : vector<16xf32>
    %58 = vector.multi_reduction <add>, %22, %cst_23 [1] : vector<16x32xf32> to vector<16xf32>
    %59 = vector.shape_cast %58 : vector<16xf32> to vector<16x1xf32>
    %cst_24 = arith.constant 3.200000e+01 : f32
    %60 = vector.broadcast %cst_24 : f32 to vector<16x1xf32>
    %61 = arith.divf %59, %60 : vector<16x1xf32>
    %62 = vector.broadcast %61 : vector<16x1xf32> to vector<16x32xf32>
    %63 = arith.subf %22, %62 : vector<16x32xf32>
    %64 = arith.mulf %63, %63 : vector<16x32xf32>
    %cst_25 = arith.constant dense<0.000000e+00> : vector<16xf32>
    %65 = vector.multi_reduction <add>, %64, %cst_25 [1] : vector<16x32xf32> to vector<16xf32>
    %66 = vector.shape_cast %65 : vector<16xf32> to vector<16x1xf32>
    %cst_26 = arith.constant 3.200000e+01 : f32
    %67 = vector.broadcast %cst_26 : f32 to vector<16x1xf32>
    %68 = arith.divf %66, %67 : vector<16x1xf32>
    %69 = vector.broadcast %61 : vector<16x1xf32> to vector<16x32xf32>
    %70 = arith.subf %22, %69 : vector<16x32xf32>
    %cst_27 = arith.constant 9.99999974E-6 : f32
    %71 = vector.broadcast %cst_27 : f32 to vector<16x1xf32>
    %72 = arith.addf %68, %71 : vector<16x1xf32>
    %73 = math.rsqrt %72 : vector<16x1xf32>
    %74 = vector.broadcast %73 : vector<16x1xf32> to vector<16x32xf32>
    %75 = arith.mulf %70, %74 : vector<16x32xf32>
    %c0_28 = arith.constant 0 : index
    %c0_29 = arith.constant 0 : index
    %76 = vector.load %arg9[%c0_28, %c0_29] : memref<1x32xf32, #tpu.memory_space<vmem>>, vector<1x32xf32>
    %77 = vector.broadcast %76 : vector<1x32xf32> to vector<16x32xf32>
    %78 = arith.mulf %75, %77 : vector<16x32xf32>
    %c0_30 = arith.constant 0 : index
    %c0_31 = arith.constant 0 : index
    %79 = vector.load %arg10[%c0_30, %c0_31] : memref<1x32xf32, #tpu.memory_space<vmem>>, vector<1x32xf32>
    %80 = vector.broadcast %79 : vector<1x32xf32> to vector<16x32xf32>
    %81 = arith.addf %78, %80 : vector<16x32xf32>
    %82 = tpu.concatenate %81, %53, %55, %57 in 1 : vector<16x32xf32>, vector<16x16xf32>, vector<16x16xf32>, vector<16x16xf32> -> vector<16x80xf32>
    %c0_32 = arith.constant 0 : index
    %c0_33 = arith.constant 0 : index
    %83 = vector.load %arg11[%c0_32, %c0_33] : memref<16x80xf32, #tpu.memory_space<vmem>>, vector<16x80xf32>
    tpu.vector_store %arg11[%c0_32, %c0_33], %82 {strides = array<i32>} : memref<16x80xf32, #tpu.memory_space<vmem>>, vector<16x80xf32>,
    return
  }
  func.func @transform_0(%arg0: i32) -> (i32, i32) {
    %c0_i32 = arith.constant 0 : i32
    %c0_i32_0 = arith.constant 0 : i32
    return %arg0, %c0_i32 : i32, i32
  }
  func.func @transform_1(%arg0: i32) -> (i32, i32, i32) {
    %c0_i32 = arith.constant 0 : i32
    %c0_i32_0 = arith.constant 0 : i32
    %c0_i32_1 = arith.constant 0 : i32
    return %c0_i32, %arg0, %c0_i32_0 : i32, i32, i32
  }
  func.func @transform_2(%arg0: i32) -> (i32, i32) {
    %c0_i32 = arith.constant 0 : i32
    %c0_i32_0 = arith.constant 0 : i32
    %c0_i32_1 = arith.constant 0 : i32
    return %c0_i32, %c0_i32_0 : i32, i32
  }
  func.func @transform_3(%arg0: i32) -> (i32, i32) {
    %c0_i32 = arith.constant 0 : i32
    %c0_i32_0 = arith.constant 0 : i32
    %c0_i32_1 = arith.constant 0 : i32
    return %c0_i32, %c0_i32_0 : i32, i32
  }
  func.func @transform_4(%arg0: i32) -> (i32, i32) {
    %c0_i32 = arith.constant 0 : i32
    %c0_i32_0 = arith.constant 0 : i32
    %c0_i32_1 = arith.constant 0 : i32
    return %c0_i32, %c0_i32_0 : i32, i32
  }
  func.func @transform_5(%arg0: i32) -> (i32, i32) {
    %c0_i32 = arith.constant 0 : i32
    %c0_i32_0 = arith.constant 0 : i32
    %c0_i32_1 = arith.constant 0 : i32
    return %c0_i32, %c0_i32_0 : i32, i32
  }
  func.func @transform_6(%arg0: i32) -> (i32, i32) {
    %c0_i32 = arith.constant 0 : i32
    %c0_i32_0 = arith.constant 0 : i32
    %c0_i32_1 = arith.constant 0 : i32
    return %c0_i32, %c0_i32_0 : i32, i32
  }
  func.func @transform_7(%arg0: i32) -> (i32, i32) {
    %c0_i32 = arith.constant 0 : i32
    %c0_i32_0 = arith.constant 0 : i32
    %c0_i32_1 = arith.constant 0 : i32
    return %c0_i32, %c0_i32_0 : i32, i32
  }
  func.func @transform_8(%arg0: i32) -> (i32, i32) {
    %c0_i32 = arith.constant 0 : i32
    %c0_i32_0 = arith.constant 0 : i32
    %c0_i32_1 = arith.constant 0 : i32
    return %c0_i32, %c0_i32_0 : i32, i32
  }
  func.func @transform_9(%arg0: i32) -> (i32, i32) {
    %c0_i32 = arith.constant 0 : i32
    %c0_i32_0 = arith.constant 0 : i32
    %c0_i32_1 = arith.constant 0 : i32
    return %c0_i32, %c0_i32_0 : i32, i32
  }
  func.func @transform_10(%arg0: i32) -> (i32, i32) {
    %c0_i32 = arith.constant 0 : i32
    %c0_i32_0 = arith.constant 0 : i32
    return %arg0, %c0_i32 : i32, i32
  }
}

</mosaic_0001>

<bundles_post_ra>
// kernel: tpu_custom_call.1
= control target key start
LH: loop header
LB: loop body
LE: loop exit
PB: predicated region body
PF: predicated region fallthrough
CT: control target
= control target key end

     0   :  { %vm71_vm0 = vcmask 1040384   ;;  %v627_v1 = vmov 0.0   ;;  %v628_v2 = vmov 0   ;;  %vm629_vm1 = vmmov 0   ;;  %s821_s0 = inlined_call_operand.vmem [shape: bf16[16,8], index: 0, kind: input, shape index: {}]   ;;  %s822_s1 = inlined_call_operand.vmem [shape: bf16[3,16,1], index: 1, kind: input, shape index: {}]   ;;  %s823_s2 = inlined_call_operand.vmem [shape: bf16[1,48], index: 2, kind: input, shape index: {}]   ;;  %s824_s3 = inlined_call_operand.vmem [shape: bf16[8,32], index: 3, kind: input, shape index: {}]   ;;  %s825_s4 = inlined_call_operand.vmem [shape: bf16[16,32], index: 4, kind: input, shape index: {}]   ;;  %s826_s5 = inlined_call_operand.vmem [shape: bf16[32,16], index: 5, kind: input, shape index: {}]   ;;  %s827_s6 = inlined_call_operand.vmem [shape: f32[1,32], index: 6, kind: input, shape index: {}]   ;;  %s828_s7 = inlined_call_operand.vmem [shape: f32[1,16], index: 7, kind: input, shape index: {}]   ;;  %s829_s8 = inlined_call_operand.vmem [shape: f32[1,32], index: 8, kind: input, shape index: {}]   ;;  %s830_s9 = inlined_call_operand.vmem [shape: f32[1,32], index: 9, kind: input, shape index: {}]   ;;  %s831_s10 = inlined_call_operand.hbm [shape: f32[16,80], index: 10, kind: output, shape index: {}]  }
   0x1   :  { %v45_v0 = vld [vmem:[%s823_s2] sm:$0x1]  ;;  %536 = vmatprep.subr.bf16.mxu0 %v627_v1  ;;  %v73_v3 = vsel %vm71_vm0, 65535, %v628_v2  ;;  %538 = vmatprep.mubr.msk.bf16.mxu0 %vm629_vm1, %v627_v1  ;;  %vm61_vm2 = vcmask 7168  }
   0x2   :  { %v75_v4 = vand.u32 %v73_v3, %v45_v0  ;;  %550 = vmatprep.subr.bf16.mxu1 %v627_v1  ;;  %552 = vmatprep.mubr.msk.bf16.mxu1 %vm629_vm1, %v627_v1  ;;  %v580_v5 = vld [vmem:[%s822_s1] sm:$0xff]  }
   0x4   :  { %537 = vmatpush3.bf16.msra.mxu0 %v75_v4 }
   0x5   :  { %15 = vsyncpa [#allocation3], 0  ;;  %v581_v6 = vld [vmem:[%s822_s1 + $0x8] sm:$0xff]   ;;  %v582_v7 = vld [vmem:[%s822_s1 + $0x10] sm:$0xff]   ;;  %s630_s20 = smov 112   ;;  %vm232_vm3 = vcmask 1043456  }
   0x6   :  { %v583_v12 = vld [vmem:[%s825_s4] sm:$0xff]   ;;  %vm178_vm4 = vcmask 130048   ;;  %vm228_vm5 = vcmask 64512   ;;  %v586_v42 = vld [vmem:[%s826_s5 + $0x8] sm:$0xff]   ;;  %vm310_vm6 = vcmask 261120   ;;  %s633_s30 = smov 16  }
   0x7   :  { %539 = vmatmul.mubr.msk.bf16.vlgmr.msra.gmra.mrb[0].mxu0 %vm61_vm2, %v580_v5  ;;  %551 = vmatpush3.bf16.msra.mxu1 %v583_v12  ;;  %v168_v36 = vld [vmem:[%s824_s3] sm:$0xf]  ;;  %vm481_vm7 = vcmask 392192   ;;  %vm484_vm8 = vcmask 523264   ;;  %vm487_vm9 = vcmask 654336  }
   0x8   :  { %542 = vmatprep.mubr.msk.bf16.mxu0 %vm629_vm1, %v627_v1  ;;  %556 = vmatprep.subr.bf16.mxu1 %v627_v1  ;;  %v234_v39 = vsel %vm232_vm3, %v168_v36, 0  ;;  %v584_v40 = vld [vmem:[%s821_s0] sm:$0xff]  }
   0x9   :  { %v585_v41 = vld [vmem:[%s826_s5] sm:$0xff]  }
   0xa   :  { %v516_v50 = vld [vmem:[%s827_s6] ss:$0 sm:$0xff]  ;;  %s631_s6 = smov 32  }
   0xb   :  { %v517_v57 = vld [vmem:[%s828_s7] ss:$0 sm:$0xff]  ;;  %s632_s7 = smov 96  }
   0xf   :  { %543 = vmatmul.mubr.msk.bf16.gmra.mrb[4].mxu0 %vm61_vm2, %v581_v6 }
  0x10   :  { %546 = vmatprep.mubr.msk.bf16.mxu0 %vm629_vm1, %v627_v1 }
  0x17   :  { %547 = vmatmul.mubr.msk.bf16.gmra.mrb[8].mxu0 %vm61_vm2, %v582_v7 }
  0xda   :  { %v714_v8 = vpop.f32.mrb[0].mxu0 }
  0xdb   :  { %140 = vrot.lane.b32.xlu0 %v714_v8, %s630_s20  ;;  %v540_v9 = vpop.f32.mrb[1].mxu0 }
  0xdc   :  { %v717_v10 = vpop.f32.mrb[2].mxu0 }
  0xdd   :  { %v541_v11 = vpop.f32.mrb[3].mxu0 }
  0xdf   :  { %142 = vrot.lane.b32.xlu0 %v717_v10, %s630_s20 }
  0xe2   :  { %v723_v13 = vpop.f32.mrb[4].mxu0 }
  0xe3   :  { %144 = vrot.lane.b32.xlu1 %v723_v13, %s630_s20  ;;  %v544_v14 = vpop.f32.mrb[5].mxu0 }
  0xe4   :  { %v726_v15 = vpop.f32.mrb[6].mxu0 }
  0xe5   :  { %v545_v16 = vpop.f32.mrb[7].mxu0 }
  0xe7   :  { %146 = vrot.lane.b32.xlu1 %v726_v15, %s630_s20 }
  0xea   :  { %v730_v17 = vpop.f32.mrb[8].mxu0 }
  0xeb   :  { %148 = vrot.lane.b32.xlu0 %v730_v17, %s630_s20  ;;  %v548_v18 = vpop.f32.mrb[9].mxu0 }
  0xec   :  { %v733_v19 = vpop.f32.mrb[10].mxu0 }
  0xed   :  { %150 = vrot.lane.b32.xlu1 %v733_v19, %s630_s20  ;;  %v549_v20 = vpop.f32.mrb[11].mxu0 }
 0x14d   :  { %v141_v21 = vpop.permute.xlu0 %140 }
 0x14e   :  { %v158_v23 = vmul.f32 %v141_v21, %v714_v8 }
 0x151   :  { %v143_v25 = vpop.permute.xlu0 %142 }
 0x152   :  { %v159_v28 = vmul.f32 %v143_v25, %v717_v10 }
 0x155   :  { %v145_v22 = vpop.permute.xlu1 %144 }
 0x156   :  { %v160_v24 = vmul.f32 %v145_v22, %v723_v13 }
 0x158   :  { %v164_v26 = vadd.f32 %v160_v24, %v158_v23 }
 0x159   :  { %v147_v27 = vpop.permute.xlu1 %146 }
 0x15a   :  { %v161_v29 = vmul.f32 %v147_v27, %v726_v15 }
 0x15c   :  { %v165_v30 = vadd.f32 %v161_v29, %v159_v28 }
 0x15d   :  { %v149_v31 = vpop.permute.xlu0 %148 }
 0x15e   :  { %v162_v32 = vmul.f32 %v149_v31, %v730_v17 }
 0x15f   :  { %v151_v33 = vpop.permute.xlu1 %150 }
 0x160   :  { %v166_v34 = vadd.f32 %v164_v26, %v162_v32  ;;  %v163_v35 = vmul.f32 %v151_v33, %v733_v19 }
 0x162   :  { %v167_v37 = vadd.f32 %v165_v30, %v163_v35 }
 0x164   :  { %v169_v38 = vpack.c.bf16 %v167_v37, %v166_v34 }
 0x166   :  { %553 = vmatmul.mubr.msk.bf16.vlgmr.msra.gmra.mrb[0].mxu1 %vm178_vm4, %v169_v38 }
 0x167   :  { %557 = vmatpush3.bf16.msra.mxu1 %v234_v39  ;;  %558 = vmatprep.mubr.msk.bf16.mxu1 %vm629_vm1, %v627_v1 }
 0x168   :  { %562 = vmatprep.subr.bf16.mxu1 %v627_v1 }
 0x16e   :  { %559 = vmatmul.mubr.msk.bf16.vlgmr.msra.gmra.mrb[4].mxu1 %vm228_vm5, %v584_v40 }
 0x16f   :  { %566 = vmatprep.mubr.msk.bf16.mxu1 %vm629_vm1, %v627_v1  ;;  %563 = vmatpush3.bf16.msra.mxu1 %v585_v41 }
 0x170   :  { %564 = vmatprep.subr.bf16.mxu1 %v627_v1 }
 0x173   :  { %565 = vmatpush3.bf16.msra.mxu1 %v586_v42 }
 0x239   :  { %v216_v43 = vpop.f32.mrb[0].mxu1 }
 0x23a   :  { %v554_v44 = vpop.f32.mrb[1].mxu1 }
 0x23b   :  { %v219_v45 = vpop.f32.mrb[2].mxu1 }
 0x23c   :  { %v555_v46 = vpop.f32.mrb[3].mxu1 }
 0x241   :  { %v270_v47 = vpop.f32.mrb[4].mxu1 }
 0x242   :  { %v271_v48 = vadd.f32 %v270_v47, %v216_v43  ;;  %v560_v49 = vpop.f32.mrb[5].mxu1 }
 0x243   :  { %v273_v51 = vpop.f32.mrb[6].mxu1 }
 0x244   :  { %v274_v52 = vadd.f32 %v273_v51, %v219_v45  ;;  %v561_v53 = vpop.f32.mrb[7].mxu1  ;;  %v284_v54 = vadd.f32 %v516_v50, %v271_v48 }
 0x246   :  { %v764_v55 = vadd.f32 %v516_v50, %v274_v52 }
 0x248   :  { %v286_v56 = vpack.c.bf16 %v764_v55, %v284_v54 }
 0x24a   :  { %567 = vmatmul.mubr.msk.bf16.vlgmr.msra.gmra.mrb[8].mxu1 %vm310_vm6, %v286_v56 }
 0x31d   :  { %v348_v58 = vpop.f32.mrb[8].mxu1 }
 0x31e   :  { %v349_v59 = vadd.f32 %v517_v57, %v348_v58  ;;  %v568_v60 = vpop.f32.mrb[9].mxu1 }
 0x31f   :  { %v351_v61 = vpop.f32.mrb[10].mxu1 }
 0x320   :  { %v521_v62 = vmul.f32 -1.442695, %v349_v59  ;;  %v352_v63 = vadd.f32 %v517_v57, %v351_v61  ;;  %v569_v0 = vpop.f32.mrb[11].mxu1 }
 0x322   :  { %587 = vpow2.f32 %v521_v62  ;;  %v522_v1 = vmul.f32 -1.442695, %v352_v63  ;;  %v523_v63 = vld [vmem:[%s829_s8] ss:$0 sm:$0xff]  ;;  %s634_s8 = smov [#allocation2]  }
 0x324   :  { %589 = vpow2.f32 %v522_v1 }
 0x32c   :  { %v588_v2 = vpop.eup %587 }
 0x32d   :  { %v361_v3 = vadd.f32 1.0, %v588_v2  ;;  %v524_v2 = vld [vmem:[%s830_s9] ss:$0 sm:$0xff]  ;;  %s495_s9 = sshll.u32 %s634_s8, 4  ;;  %s496_s9 = int_to_ptr.vmem [resolvable:$true] %s495_s9 }
 0x32e   :  { %v590_v4 = vpop.eup %589  ;;  %s603_s15 = scalar_lea.vmem %s496_s9, 256  ;;  %p608_p1 = scmp.lt.s32.totalorder %s496_s9, %s496_s9 }
 0x32f   :  { %591 = vrcp.f32 %v361_v3  ;;  %v362_v5 = vadd.f32 1.0, %v590_v4  ;;  %p604_p0 = scmp.ne.s32.totalorder %s496_s9, %s603_s15  ;;  %p609_p2 = scmp.lt.s32.totalorder %s603_s15, %s603_s15 }
 0x331   :  { %593 = vrcp.f32 %v362_v5  ;;  %p610_p3 = por %p609_p2, %p608_p1 }
 0x333   :  { %p611_p4 = pnand %p610_p3, %p604_p0 }
 0x339   :  { %v592_v6 = vpop.eup %591 }
 0x33a   :  { %369 = vrot.lane.b32.xlu0 %v592_v6, %s631_s6 }
 0x33b   :  { %v594_v7 = vpop.eup %593 }
 0x33c   :  { %371 = vrot.lane.b32.xlu1 %v594_v7, %s631_s6 }
 0x3ac   :  { %v370_v9 = vpop.permute.xlu0 %369 }
 0x3ad   :  { %v774_v11 = vmul.f32 %v370_v9, %v714_v8  ;;  %v377_v12 = vmul.f32 %v370_v9, %v723_v13  ;;  %v379_v14 = vmul.f32 %v370_v9, %v730_v17 }
 0x3ae   :  { %v372_v16 = vpop.permute.xlu1 %371 }
 0x3af   :  { %v381_v18 = vmul.f32 %v774_v11, %v774_v11  ;;  %v383_v20 = vmul.f32 %v377_v12, %v377_v12  ;;  %v781_v21 = vmul.f32 %v372_v16, %v717_v10  ;;  %v378_v22 = vmul.f32 %v372_v16, %v726_v15 }
 0x3b0   :  { %v380_v23 = vmul.f32 %v372_v16, %v733_v19  ;;  %v387_v24 = vmul.f32 %v379_v14, %v379_v14  ;;  %v418_v10 = vsel %vm310_vm6, %v284_v54, 0.0  ;;  %v421_v15 = vsel %vm310_vm6, %v764_v55, 0.0 }
 0x3b1   :  { %v382_v8 = vmul.f32 %v781_v21, %v781_v21  ;;  %v385_v25 = vadd.f32 %v383_v20, %v381_v18  ;;  %v384_v13 = vmul.f32 %v378_v22, %v378_v22 }
 0x3b2   :  { %v388_v17 = vmul.f32 %v380_v23, %v380_v23 }
 0x3b3   :  { %v389_v26 = vadd.f32 %v387_v24, %v385_v25  ;;  %v386_v27 = vadd.f32 %v384_v13, %v382_v8 }
 0x3b5   :  { %v391_v28 = vmax.f32 %v389_v26, 1e-08  ;;  %v390_v29 = vadd.f32 %v388_v17, %v386_v27 }
 0x3b7   :  { %395 = vrot.lane.b32.xlu0 %v391_v28, %s632_s7  ;;  %v392_v30 = vmax.f32 %v390_v29, 1e-08 }
 0x3b9   :  { %397 = vrot.lane.b32.xlu1 %v392_v30, %s632_s7 }
 0x3d6   :  { %419 = vadd.xlane.f32.xlu0 %v418_v10 }
 0x3dd   :  { %422 = vadd.xlane.f32.xlu1 %v421_v15 }
 0x429   :  { %v396_v19 = vpop.permute.xlu0 %395 }
 0x42a   :  { %v401_v31 = vsel %vm178_vm4, %v396_v19, 0.0 }
 0x42b   :  { %402 = vadd.xlane.f32.xlu0 %v401_v31  ;;  %v398_v32 = vpop.permute.xlu1 %397 }
 0x42c   :  { %v404_v33 = vsel %vm178_vm4, %v398_v32, 0.0 }
 0x42f   :  { %405 = vadd.xlane.f32.xlu0 %v404_v33 }
 0x463   :  { %v420_v34 = vpop.xlane.xlu0 %419 }
 0x464   :  { %v425_v35 = vmul.f32 0.03125, %v420_v34 }
 0x466   :  { %v427_v36 = vsub.f32 %v284_v54, %v425_v35 }
 0x468   :  { %v429_v37 = vmul.f32 %v427_v36, %v427_v36 }
 0x46a   :  { %v431_v38 = vsel %vm310_vm6, %v429_v37, 0.0  ;;  %v423_v39 = vpop.xlane.xlu1 %422 }
 0x46b   :  { %432 = vadd.xlane.f32.xlu1 %v431_v38  ;;  %v426_v40 = vmul.f32 0.03125, %v423_v39 }
 0x46d   :  { %v428_v41 = vsub.f32 %v764_v55, %v426_v40 }
 0x46f   :  { %v430_v42 = vmul.f32 %v428_v41, %v428_v41 }
 0x471   :  { %v434_v43 = vsel %vm310_vm6, %v430_v42, 0.0 }
 0x472   :  { %435 = vadd.xlane.f32.xlu0 %v434_v43 }
 0x4b8   :  { %v403_v44 = vpop.xlane.xlu0 %402 }
 0x4b9   :  { %v408_v45 = vmul.f32 0.0625, %v403_v44 }
 0x4bb   :  { %595 = vrsqrt.f32 %v408_v45 }
 0x4bc   :  { %v406_v46 = vpop.xlane.xlu0 %405 }
 0x4bd   :  { %v409_v47 = vmul.f32 0.0625, %v406_v46 }
 0x4bf   :  { %597 = vrsqrt.f32 %v409_v47 }
 0x4c5   :  { %v596_v48 = vpop.eup %595 }
 0x4c6   :  { %v414_v49 = vmul.f32 %v596_v48, %v377_v12  ;;  %v416_v51 = vmul.f32 %v596_v48, %v379_v14  ;;  %v412_v6 = vmul.f32 %v596_v48, %v774_v11 }
 0x4c8   :  { %465 = vrot.lane.b32.xlu1 %v414_v49, %s633_s30 }
 0x4c9   :  { %v598_v50 = vpop.eup %597 }
 0x4ca   :  { %v415_v52 = vmul.f32 %v598_v50, %v378_v22  ;;  %v417_v53 = vmul.f32 %v598_v50, %v380_v23  ;;  %v413_v16 = vmul.f32 %v598_v50, %v781_v21 }
 0x4cc   :  { %473 = vrot.lane.b32.xlu1 %v416_v51, %s631_s6  ;;  %467 = vrot.lane.b32.xlu0 %v415_v52, %s633_s30 }
 0x4d0   :  { %475 = vrot.lane.b32.xlu1 %v417_v53, %s631_s6 }
 0x4f8   :  { %v433_v54 = vpop.xlane.xlu1 %432 }
 0x4f9   :  { %v437_v55 = vmul.f32 0.03125, %v433_v54 }
 0x4fb   :  { %v439_v57 = vadd.f32 1e-05, %v437_v55 }
 0x4fd   :  { %599 = vrsqrt.f32 %v439_v57 }
 0x4ff   :  { %v436_v56 = vpop.xlane.xlu0 %435 }
 0x500   :  { %v438_v58 = vmul.f32 0.03125, %v436_v56 }
 0x502   :  { %v440_v59 = vadd.f32 1e-05, %v438_v58 }
 0x504   :  { %601 = vrsqrt.f32 %v440_v59 }
 0x507   :  { %v600_v60 = vpop.eup %599 }
 0x508   :  { %v443_v61 = vmul.f32 %v600_v60, %v427_v36 }
 0x50a   :  { %v452_v0 = vmul.f32 %v523_v63, %v443_v61 }
 0x50c   :  { %v461_v3 = vadd.f32 %v524_v2, %v452_v0 }
 0x50e   :  { %v602_v62 = vpop.eup %601  ;;  %v479_v7 = vsel %vm310_vm6, %v461_v3, %v412_v6 }
 0x50f   :  { %v444_v1 = vmul.f32 %v602_v62, %v428_v41 }
 0x511   :  { %v453_v4 = vmul.f32 %v523_v63, %v444_v1 }
 0x513   :  { %v462_v9 = vadd.f32 %v524_v2, %v453_v4 }
 0x515   :  { %v480_v22 = vsel %vm310_vm6, %v462_v9, %v413_v16 }
 0x53a   :  { %v466_v5 = vpop.permute.xlu1 %465 }
 0x53b   :  { %v482_v12 = vsel %vm481_vm7, %v479_v7, %v466_v5 }
 0x53e   :  { %v474_v14 = vpop.permute.xlu1 %473  ;;  %v468_v18 = vpop.permute.xlu0 %467 }
 0x53f   :  { %v485_v20 = vsel %vm484_vm8, %v482_v12, %v474_v14  ;;  %v483_v23 = vsel %vm481_vm7, %v480_v22, %v468_v18 }
 0x540   :  { %488 = vst.msk [vmem:[#allocation2] sm:$0xff] %vm487_vm9, %v485_v20 }
 0x542   :  { %v476_v11 = vpop.permute.xlu1 %475 }
 0x543   :  { %v486_v24 = vsel %vm484_vm8, %v483_v23, %v476_v11 }
 0x544   :  { %489 = vst.msk [vmem:[#allocation2 + $0x8] sm:$0xff] %vm487_vm9, %v486_v24 }
 0x545   :  { %614 = shalt.err (!%p611_p4)
}
 0x546   :  { %s615_s17 = scalar_lea.hbm %s831_s10, 256 }
 0x547   :  { %p616_p5 = scmp.ne.s32.totalorder %s831_s10, %s615_s17  ;;  %p619_p6 = scmp.lt.u32.totalorder %s615_s17, %s831_s10 }
 0x549   :  { %p621_p7 = pnand %p619_p6, %p616_p5 }
 0x54b   :  { %624 = shalt.err (!%p621_p7)
}
 0x54c   :  { %s635_s22 = smov 128   ;;  %s636_s1 = smov 8  }
 0x54d   :  { %501 = dma.vmem_to_hbm [thread:$0]  %s496_s9, 256, %s831_s10, [#allocation3], %s635_s22, %s635_s22, %s636_s1  }
 0x54e   :  { %625 = dma.done.wait [#allocation3], 256  }
 0x54f   :  { %626 = vsyncadd [#allocation3], 4294967040 }
 0x550   :  { %505 = vsyncpa [#allocation3], 1 }

</bundles_post_ra>
